<compile_context>
chip_gen: v7x
topology: tpu7x:2x2x1
jax: 0.10.0
libtpu: 0.0.40
codegen_flags: <defaults>
</compile_context>

<pallas_src>
import functools

import jax
import jax.numpy as jnp
from jax.experimental import pallas as pl
from jax.experimental.pallas import tpu as pltpu


def actor_kernel(x_ref,              # [n_states, TB]  feature-major state block
                 w1_ref, b1_ref,     # [h, n_states],  [h, 1]
                 w2_ref, b2_ref,     # [h, h],         [h, 1]
                 w3_ref, b3_ref,     # [h, h],         [h, 1]
                 w4_ref, b4_ref,     # [a, h],         [a, 1]
                 o_ref,              # [a, TB]         feature-major action block
                 *, max_action):
    # Every layer: (feat_out, feat_in) @ (feat_in, TB).  Batch dim is on the
    # 128-lane axis, so bias-add / ReLU run at full lane utilization and the
    # MXU sees N = TB (instead of N = 32).  f32 accumulation throughout.
    h = jnp.dot(w1_ref[...], x_ref[...], preferred_element_type=jnp.float32)
    h = jnp.maximum(h + b1_ref[...], 0.0)
    h = jnp.dot(w2_ref[...], h, preferred_element_type=jnp.float32)
    h = jnp.maximum(h + b2_ref[...], 0.0)
    h = jnp.dot(w3_ref[...], h, preferred_element_type=jnp.float32)
    h = jnp.maximum(h + b3_ref[...], 0.0)
    a = jnp.dot(w4_ref[...], h, preferred_element_type=jnp.float32) + b4_ref[...]
    # tanh rides the EUP slot; the max_action scale is a cheap VPU mul.
    o_ref[...] = (max_action * jnp.tanh(a)).astype(o_ref.dtype)


def actor_forward(state, params, max_action, *, block_rows=8192):
    """state: [B, n_states] f32; params: dict of weights/biases; max_action: float.

    Returns actions of shape [B, action_dim] (same semantics as the PyTorch module).
    """
    B, n_states = state.shape
    hidden = params["w1"].shape[1]
    action_dim = params["w4"].shape[1]

    # Feature-major operands: weights (out, in), biases (out, 1), state (n_states, B).
    # The weight/bias transposes are tiny one-time ops; the state transpose is the
    # only per-call glue and is far cheaper than lane-padded (batch, feature) tiles.
    w1t, w2t, w3t, w4t = (params["w1"].T, params["w2"].T,
                          params["w3"].T, params["w4"].T)
    b1t = params["b1"].reshape(hidden, 1)
    b2t = params["b2"].reshape(hidden, 1)
    b3t = params["b3"].reshape(hidden, 1)
    b4t = params["b4"].reshape(action_dim, 1)
    state_t = state.T                                  # (n_states, B)

    # Batch tiling along the lane axis.  Small batch -> one full block.
    # Large batch -> tiles of `block_rows` rounded to a multiple of 128 so the
    # lane-dim block shape satisfies the (8,128) rule.  No padding: the grid is
    # cdiv(B, tb) and Pallas masks the ragged boundary block on read/write.
    if B <= block_rows:
        tb = B
    else:
        tb = max(128, (block_rows // 128) * 128)
    grid = (pl.cdiv(B, tb),)

    # Grid-invariant operands: whole-array, VMEM-resident, no per-step blocking.
    resident = pl.BlockSpec(memory_space=pltpu.MemorySpace.VMEM)

    kernel = functools.partial(actor_kernel, max_action=float(max_action))

    out_t = pl.pallas_call(
        kernel,
        out_shape=jax.ShapeDtypeStruct((action_dim, B), jnp.float32),
        grid=grid,
        in_specs=[
            pl.BlockSpec((n_states, tb), lambda i: (0, i)),   # state columns
            resident, resident,     # w1, b1
            resident, resident,     # w2, b2
            resident, resident,     # w3, b3
            resident, resident,     # w4, b4
        ],
        out_specs=pl.BlockSpec((action_dim, tb), lambda i: (0, i)),
        compiler_params=pltpu.CompilerParams(
            dimension_semantics=("parallel",)),   # shard batch blocks on v7x's 2 TCs
    )(state_t, w1t, b1t, w2t, b2t, w3t, b3t, w4t, b4t)

    # Back to the module's (B, action_dim) layout.  For action_dim == 1 the
    # "transpose" of (1, B) -> (B, 1) is a free reshape (same flat layout).
    if action_dim == 1:
        return out_t.reshape(B, 1)
    return out_t.T


def init_actor_params(key, n_states, action_dim, hidden1):
    """Deterministic init mimicking PyTorch nn.Linear default: U(-1/sqrt(fan_in), 1/sqrt(fan_in))."""
    dims = [(n_states, hidden1), (hidden1, hidden1),
            (hidden1, hidden1), (hidden1, action_dim)]
    params = {}
    for i, (fan_in, fan_out) in enumerate(dims, start=1):
        key, kw, kb = jax.random.split(key, 3)
        bound = 1.0 / (fan_in ** 0.5)
        params[f"w{i}"] = jax.random.uniform(kw, (fan_in, fan_out), jnp.float32, -bound, bound)
        params[f"b{i}"] = jax.random.uniform(kb, (1, fan_out), jnp.float32, -bound, bound)
    return params


def actor_reference(state, params, max_action):
    h = jnp.maximum(state @ params["w1"] + params["b1"], 0.0)
    h = jnp.maximum(h @ params["w2"] + params["b2"], 0.0)
    h = jnp.maximum(h @ params["w3"] + params["b3"], 0.0)
    return max_action * jnp.tanh(h @ params["w4"] + params["b4"])


if __name__ == "__main__":
    # Pendulum-v1: n_states=3, action_dim=1, max_action=2.0
    n_states, action_dim, hidden1, max_action = 3, 1, 32, 2.0
    batch = 2

    key = jax.random.PRNGKey(0)
    key, ks = jax.random.split(key)
    state = jax.random.normal(ks, (batch, n_states), dtype=jnp.float32)
    params = init_actor_params(key, n_states, action_dim, hidden1)

    # Small-batch path (single full block, grid=(1,)) — tight correctness check.
    out = jax.block_until_ready(actor_forward(state, params, max_action))
    ref = actor_reference(state, params, max_action)
    assert out.shape == (batch, action_dim)
    assert jnp.allclose(out, ref, atol=1e-5, rtol=1e-5), (out, ref)

    # Multi-block grid with a ragged tail (no padding: Pallas masks the
    # boundary block) — exercises the cdiv grid, resident weights, and the
    # feature-major batch-on-lanes layout.
    big_b = 1000
    key, kb = jax.random.split(key)
    big_state = jax.random.normal(kb, (big_b, n_states), dtype=jnp.float32)
    big_out = jax.block_until_ready(
        actor_forward(big_state, params, max_action, block_rows=256))
    big_ref = actor_reference(big_state, params, max_action)
    assert big_out.shape == (big_b, action_dim)
    assert jnp.allclose(big_out, big_ref, atol=1e-3, rtol=1e-3)

    print("KERNEL_OK")
</pallas_src>

<mosaic_0001>
module attributes {stable_mosaic.version = 11 : i64} {
  func.func @actor_kernel(%arg0: i32, %arg1: memref<3x2xf32, #tpu.memory_space<vmem>>, %arg2: memref<32x3xf32, #tpu.memory_space<vmem>>, %arg3: memref<32x1xf32, #tpu.memory_space<vmem>>, %arg4: memref<32x32xf32, #tpu.memory_space<vmem>>, %arg5: memref<32x1xf32, #tpu.memory_space<vmem>>, %arg6: memref<32x32xf32, #tpu.memory_space<vmem>>, %arg7: memref<32x1xf32, #tpu.memory_space<vmem>>, %arg8: memref<1x32xf32, #tpu.memory_space<vmem>>, %arg9: memref<1x1xf32, #tpu.memory_space<vmem>>, %arg10: memref<1x2xf32, #tpu.memory_space<vmem>>) attributes {dimension_semantics = [#tpu.dimension_semantics<parallel>], iteration_bounds = array<i64: 1>, scalar_prefetch = 0 : i64, scratch_operands = 0 : i64, tpu.core_type = #tpu.core_type<tc>, window_params = [{transform_indices = @transform_0, window_bounds = array<i64: 3, 2>}, {pipeline_mode = #tpu.pipeline_mode<synchronous>, transform_indices = @transform_1, window_bounds = array<i64: 32, 3>}, {pipeline_mode = #tpu.pipeline_mode<synchronous>, transform_indices = @transform_2, window_bounds = array<i64: 32, 1>}, {pipeline_mode = #tpu.pipeline_mode<synchronous>, transform_indices = @transform_3, window_bounds = array<i64: 32, 32>}, {pipeline_mode = #tpu.pipeline_mode<synchronous>, transform_indices = @transform_4, window_bounds = array<i64: 32, 1>}, {pipeline_mode = #tpu.pipeline_mode<synchronous>, transform_indices = @transform_5, window_bounds = array<i64: 32, 32>}, {pipeline_mode = #tpu.pipeline_mode<synchronous>, transform_indices = @transform_6, window_bounds = array<i64: 32, 1>}, {pipeline_mode = #tpu.pipeline_mode<synchronous>, transform_indices = @transform_7, window_bounds = array<i64: 1, 32>}, {pipeline_mode = #tpu.pipeline_mode<synchronous>, transform_indices = @transform_8, window_bounds = array<i64: 1, 1>}, {transform_indices = @transform_9, window_bounds = array<i64: 1, 2>}]} {
    %c0 = arith.constant 0 : index
    %c0_0 = arith.constant 0 : index
    %0 = vector.load %arg2[%c0, %c0_0] : memref<32x3xf32, #tpu.memory_space<vmem>>, vector<32x3xf32>
    %c0_1 = arith.constant 0 : index
    %c0_2 = arith.constant 0 : index
    %1 = vector.load %arg1[%c0_1, %c0_2] : memref<3x2xf32, #tpu.memory_space<vmem>>, vector<3x2xf32>
    %cst = arith.constant dense<0.000000e+00> : vector<32x2xf32>
    %2 = tpu.matmul %0, %1, %cst {dimension_numbers = #tpu.dot_dimension_numbers<[1], [0], [0], [1], [0, 0, 1, 1], [], []>} : vector<32x3xf32>, vector<3x2xf32>, vector<32x2xf32> -> vector<32x2xf32>
    %c0_3 = arith.constant 0 : index
    %c0_4 = arith.constant 0 : index
    %3 = vector.load %arg3[%c0_3, %c0_4] : memref<32x1xf32, #tpu.memory_space<vmem>>, vector<32x1xf32>
    %4 = vector.broadcast %3 : vector<32x1xf32> to vector<32x2xf32>
    %5 = arith.addf %2, %4 : vector<32x2xf32>
    %cst_5 = arith.constant 0.000000e+00 : f32
    %6 = vector.broadcast %cst_5 : f32 to vector<32x2xf32>
    %7 = arith.maximumf %5, %6 : vector<32x2xf32>
    %c0_6 = arith.constant 0 : index
    %c0_7 = arith.constant 0 : index
    %8 = vector.load %arg4[%c0_6, %c0_7] : memref<32x32xf32, #tpu.memory_space<vmem>>, vector<32x32xf32>
    %cst_8 = arith.constant dense<0.000000e+00> : vector<32x2xf32>
    %9 = tpu.matmul %8, %7, %cst_8 {dimension_numbers = #tpu.dot_dimension_numbers<[1], [0], [0], [1], [0, 0, 1, 1], [], []>} : vector<32x32xf32>, vector<32x2xf32>, vector<32x2xf32> -> vector<32x2xf32>
    %c0_9 = arith.constant 0 : index
    %c0_10 = arith.constant 0 : index
    %10 = vector.load %arg5[%c0_9, %c0_10] : memref<32x1xf32, #tpu.memory_space<vmem>>, vector<32x1xf32>
    %11 = vector.broadcast %10 : vector<32x1xf32> to vector<32x2xf32>
    %12 = arith.addf %9, %11 : vector<32x2xf32>
    %cst_11 = arith.constant 0.000000e+00 : f32
    %13 = vector.broadcast %cst_11 : f32 to vector<32x2xf32>
    %14 = arith.maximumf %12, %13 : vector<32x2xf32>
    %c0_12 = arith.constant 0 : index
    %c0_13 = arith.constant 0 : index
    %15 = vector.load %arg6[%c0_12, %c0_13] : memref<32x32xf32, #tpu.memory_space<vmem>>, vector<32x32xf32>
    %cst_14 = arith.constant dense<0.000000e+00> : vector<32x2xf32>
    %16 = tpu.matmul %15, %14, %cst_14 {dimension_numbers = #tpu.dot_dimension_numbers<[1], [0], [0], [1], [0, 0, 1, 1], [], []>} : vector<32x32xf32>, vector<32x2xf32>, vector<32x2xf32> -> vector<32x2xf32>
    %c0_15 = arith.constant 0 : index
    %c0_16 = arith.constant 0 : index
    %17 = vector.load %arg7[%c0_15, %c0_16] : memref<32x1xf32, #tpu.memory_space<vmem>>, vector<32x1xf32>
    %18 = vector.broadcast %17 : vector<32x1xf32> to vector<32x2xf32>
    %19 = arith.addf %16, %18 : vector<32x2xf32>
    %cst_17 = arith.constant 0.000000e+00 : f32
    %20 = vector.broadcast %cst_17 : f32 to vector<32x2xf32>
    %21 = arith.maximumf %19, %20 : vector<32x2xf32>
    %c0_18 = arith.constant 0 : index
    %c0_19 = arith.constant 0 : index
    %22 = vector.load %arg8[%c0_18, %c0_19] : memref<1x32xf32, #tpu.memory_space<vmem>>, vector<1x32xf32>
    %cst_20 = arith.constant dense<0.000000e+00> : vector<1x2xf32>
    %23 = tpu.matmul %22, %21, %cst_20 {dimension_numbers = #tpu.dot_dimension_numbers<[1], [0], [0], [1], [0, 0, 1, 1], [], []>} : vector<1x32xf32>, vector<32x2xf32>, vector<1x2xf32> -> vector<1x2xf32>
    %c0_21 = arith.constant 0 : index
    %c0_22 = arith.constant 0 : index
    %24 = vector.load %arg9[%c0_21, %c0_22] : memref<1x1xf32, #tpu.memory_space<vmem>>, vector<1x1xf32>
    %25 = vector.broadcast %24 : vector<1x1xf32> to vector<1x2xf32>
    %26 = arith.addf %23, %25 : vector<1x2xf32>
    %27 = math.tanh %26 : vector<1x2xf32>
    %cst_23 = arith.constant 2.000000e+00 : f32
    %28 = vector.broadcast %cst_23 : f32 to vector<1x2xf32>
    %29 = arith.mulf %28, %27 : vector<1x2xf32>
    %c0_24 = arith.constant 0 : index
    %c0_25 = arith.constant 0 : index
    %30 = vector.load %arg10[%c0_24, %c0_25] : memref<1x2xf32, #tpu.memory_space<vmem>>, vector<1x2xf32>
    tpu.vector_store %arg10[%c0_24, %c0_25], %29 {strides = array<i32>} : memref<1x2xf32, #tpu.memory_space<vmem>>, vector<1x2xf32>,
    return
  }
  func.func @transform_0(%arg0: i32) -> (i32, i32) {
    %c0_i32 = arith.constant 0 : i32
    %c0_i32_0 = arith.constant 0 : i32
    return %c0_i32, %arg0 : i32, i32
  }
  func.func @transform_1(%arg0: i32) -> (i32, i32) {
    %c0_i32 = arith.constant 0 : i32
    %c0_i32_0 = arith.constant 0 : i32
    %c0_i32_1 = arith.constant 0 : i32
    return %c0_i32, %c0_i32_0 : i32, i32
  }
  func.func @transform_2(%arg0: i32) -> (i32, i32) {
    %c0_i32 = arith.constant 0 : i32
    %c0_i32_0 = arith.constant 0 : i32
    %c0_i32_1 = arith.constant 0 : i32
    return %c0_i32, %c0_i32_0 : i32, i32
  }
  func.func @transform_3(%arg0: i32) -> (i32, i32) {
    %c0_i32 = arith.constant 0 : i32
    %c0_i32_0 = arith.constant 0 : i32
    %c0_i32_1 = arith.constant 0 : i32
    return %c0_i32, %c0_i32_0 : i32, i32
  }
  func.func @transform_4(%arg0: i32) -> (i32, i32) {
    %c0_i32 = arith.constant 0 : i32
    %c0_i32_0 = arith.constant 0 : i32
    %c0_i32_1 = arith.constant 0 : i32
    return %c0_i32, %c0_i32_0 : i32, i32
  }
  func.func @transform_5(%arg0: i32) -> (i32, i32) {
    %c0_i32 = arith.constant 0 : i32
    %c0_i32_0 = arith.constant 0 : i32
    %c0_i32_1 = arith.constant 0 : i32
    return %c0_i32, %c0_i32_0 : i32, i32
  }
  func.func @transform_6(%arg0: i32) -> (i32, i32) {
    %c0_i32 = arith.constant 0 : i32
    %c0_i32_0 = arith.constant 0 : i32
    %c0_i32_1 = arith.constant 0 : i32
    return %c0_i32, %c0_i32_0 : i32, i32
  }
  func.func @transform_7(%arg0: i32) -> (i32, i32) {
    %c0_i32 = arith.constant 0 : i32
    %c0_i32_0 = arith.constant 0 : i32
    %c0_i32_1 = arith.constant 0 : i32
    return %c0_i32, %c0_i32_0 : i32, i32
  }
  func.func @transform_8(%arg0: i32) -> (i32, i32) {
    %c0_i32 = arith.constant 0 : i32
    %c0_i32_0 = arith.constant 0 : i32
    %c0_i32_1 = arith.constant 0 : i32
    return %c0_i32, %c0_i32_0 : i32, i32
  }
  func.func @transform_9(%arg0: i32) -> (i32, i32) {
    %c0_i32 = arith.constant 0 : i32
    %c0_i32_0 = arith.constant 0 : i32
    return %c0_i32, %arg0 : i32, i32
  }
}

</mosaic_0001>

<bundles_post_ra>
// kernel: tpu_custom_call.1
= control target key start
LH: loop header
LB: loop body
LE: loop exit
PB: predicated region body
PF: predicated region fallthrough
CT: control target
= control target key end

     0   :  { %s834_s0 = inlined_call_operand.vmem [shape: f32[3,2], index: 0, kind: input, shape index: {}]   ;;  %s835_s1 = inlined_call_operand.vmem [shape: f32[32,3], index: 1, kind: input, shape index: {}]   ;;  %s836_s2 = inlined_call_operand.vmem [shape: f32[32,1], index: 2, kind: input, shape index: {}]   ;;  %s837_s3 = inlined_call_operand.vmem [shape: f32[32,32], index: 3, kind: input, shape index: {}]   ;;  %s838_s4 = inlined_call_operand.vmem [shape: f32[32,1], index: 4, kind: input, shape index: {}]   ;;  %s839_s5 = inlined_call_operand.vmem [shape: f32[32,32], index: 5, kind: input, shape index: {}]   ;;  %s840_s6 = inlined_call_operand.vmem [shape: f32[32,1], index: 6, kind: input, shape index: {}]   ;;  %s841_s7 = inlined_call_operand.vmem [shape: f32[1,32], index: 7, kind: input, shape index: {}]   ;;  %s842_s8 = inlined_call_operand.<no memory space> [shape: f32[1,1], index: 8, kind: input, shape index: {}]   ;;  %s843_s9 = inlined_call_operand.hbm [shape: f32[1,2], index: 9, kind: output, shape index: {}]  }
   0x1   :  { %v14_v0 = vstv %s842_s8 }
   0x2   :  { %15 = vst [vmem:[#allocation2] sm:$0x1] %v14_v0 }
   0x3   :  { %v39_v1 = vld [vmem:[%s834_s0] sm:$0x7]  ;;  %vm77_vm0 = vcmask 1042432   ;;  %vm64_vm1 = vcmask 23552   ;;  %v36_v3 = vld [vmem:[%s835_s1 + $0x8] sm:$0xff]  ;;  %v37_v4 = vld [vmem:[%s835_s1 + $0x10] sm:$0xff] }
   0x4   :  { %v35_v2 = vld [vmem:[%s835_s1] sm:$0xff]  ;;  %571 = vmatprep.subr.msk.mxu0 %vm77_vm0, %v39_v1  ;;  %v673_v6 = vmov 0   ;;  %v42_v7 = vld [vmem:[%s836_s2 + $0x10] sm:$0xff]  ;;  %v38_v8 = vld [vmem:[%s835_s1 + $0x18] sm:$0xff] }
   0x5   :  { %573 = vmatprep.mubr.msk.f32.mxu0 %vm64_vm1, %v35_v2  ;;  %v40_v5 = vld [vmem:[%s836_s2] sm:$0xff]  ;;  %572 = vmatpush3.msk.msra.mxu0 %vm77_vm0, %v39_v1  ;;  %v41_v9 = vld [vmem:[%s836_s2 + $0x8] sm:$0xff]  ;;  %v43_v10 = vld [vmem:[%s836_s2 + $0x18] sm:$0xff] }
   0x6   :  { %645 = vset.pattern.permute.xlu0 %v673_v6  ;;  %574 = vmatmul.mubr.msk.f32.vlgmr.msra.gmra.mrb[0].mxu0 %vm64_vm1, %v36_v3 }
   0x7   :  { %46 = vperm.xlu0 %645, %v40_v5   ;;  %576 = vmatprep.mubr.msk.f32.mxu0 %vm64_vm1, %v37_v4 }
   0x8   :  { %646 = vset.pattern.permute.xlu1 %v673_v6 }
   0x9   :  { %56 = vperm.xlu1 %646, %v42_v7  }
   0xa   :  { %16 = vsyncpa [#allocation4], 0  ;;  %577 = vmatmul.mubr.msk.f32.gmra.mrb[2].mxu0 %vm64_vm1, %v38_v8  ;;  %v174_v11 = vld [vmem:[%s838_s4] sm:$0xff]  ;;  %v175_v12 = vld [vmem:[%s838_s4 + $0x8] sm:$0xff]  ;;  %vm198_vm2 = vcmask 261120   ;;  %v674_v0 = vmov 0.0|0.0  }
   0xb   :  { %51 = vperm.xlu0 %645, %v41_v9   ;;  %v176_v13 = vld [vmem:[%s838_s4 + $0x10] sm:$0xff]  ;;  %v177_v14 = vld [vmem:[%s838_s4 + $0x18] sm:$0xff]  ;;  %v304_v15 = vld [vmem:[%s840_s6] sm:$0xff]  ;;  %vm675_vm3 = vmmov 0   ;;  %v676_v1 = vmov 0.0   ;;  %s677_s10 = smov [#allocation3]  }
   0xc   :  { %v305_v16 = vld [vmem:[%s840_s6 + $0x8] sm:$0xff]  ;;  %v306_v17 = vld [vmem:[%s840_s6 + $0x10] sm:$0xff]  ;;  %v307_v18 = vld [vmem:[%s840_s6 + $0x18] sm:$0xff]  ;;  %s523_s2 = sshll.u32 %s677_s10, 4  ;;  %vm515_vm4 = vcmask 8192   ;;  %s524_s2 = int_to_ptr.vmem [resolvable:$true] %s523_s2 }
   0xd   :  { %61 = vperm.xlu1 %646, %v43_v10   ;;  %v430_v19 = vld [vmem:[#allocation2] sm:$0x1]  ;;  %v171_v39 = vld [vmem:[%s837_s3 + $0x8] sm:$0xff]  ;;  %v172_v40 = vld [vmem:[%s837_s3 + $0x10] sm:$0xff]  ;;  %s649_s11 = scalar_lea.vmem %s524_s2, 16  ;;  %p654_p1 = scmp.lt.s32.totalorder %s524_s2, %s524_s2 }
   0xe   :  { %v170_v20 = vld [vmem:[%s837_s3] sm:$0xff]  ;;  %v173_v41 = vld [vmem:[%s837_s3 + $0x18] sm:$0xff]  ;;  %v301_v61 = vld [vmem:[%s839_s5 + $0x8] sm:$0xff]  ;;  %p650_p0 = scmp.ne.s32.totalorder %s524_s2, %s649_s11 }
   0xf   :  { %180 = vperm.xlu0 %645, %v174_v11   ;;  %587 = vmatprep.mubr.msk.f32.mxu1 %vm198_vm2, %v170_v20  ;;  %v300_v42 = vld [vmem:[%s839_s5] sm:$0xff]  ;;  %v302_v62 = vld [vmem:[%s839_s5 + $0x10] sm:$0xff]  ;;  %v303_v63 = vld [vmem:[%s839_s5 + $0x18] sm:$0xff] }
  0x10   :  { %601 = vmatprep.mubr.msk.f32.mxu0 %vm198_vm2, %v300_v42  ;;  %v429_v20 = vld [vmem:[%s841_s7] sm:$0x1]  ;;  %s653_s7 = scalar_lea.vmem %s524_s2, 32 }
  0x11   :  { %185 = vperm.xlu1 %646, %v175_v12   ;;  %p655_p2 = scmp.lt.s32.totalorder %s653_s7, %s649_s11 }
  0x13   :  { %190 = vperm.xlu0 %645, %v176_v13   ;;  %p656_p3 = por %p655_p2, %p654_p1 }
  0x15   :  { %195 = vperm.xlu1 %646, %v177_v14   ;;  %p657_p4 = pnand %p656_p3, %p650_p0 }
  0x17   :  { %310 = vperm.xlu0 %645, %v304_v15  }
  0x19   :  { %315 = vperm.xlu1 %646, %v305_v16  }
  0x1b   :  { %320 = vperm.xlu0 %645, %v306_v17  }
  0x1d   :  { %325 = vperm.xlu1 %646, %v307_v18  }
  0x1f   :  { %433 = vperm.xlu0 %645, %v430_v19  }
  0x86   :  { %v47_v21 = vpop.permute.xlu0 %46 }
  0x88   :  { %v57_v22 = vpop.permute.xlu1 %56 }
  0x8a   :  { %v52_v23 = vpop.permute.xlu0 %51 }
  0x8c   :  { %v62_v29 = vpop.permute.xlu1 %61 }
  0x8e   :  { %v181_v44 = vpop.permute.xlu0 %180 }
  0x90   :  { %v186_v43 = vpop.permute.xlu1 %185 }
  0x92   :  { %v191_v53 = vpop.permute.xlu0 %190 }
  0x94   :  { %v196_v50 = vpop.permute.xlu1 %195 }
  0x96   :  { %v311_v3 = vpop.permute.xlu0 %310 }
  0x98   :  { %v316_v2 = vpop.permute.xlu1 %315 }
  0x9a   :  { %v321_v12 = vpop.permute.xlu0 %320 }
  0x9c   :  { %v326_v9 = vpop.permute.xlu1 %325 }
  0xd9   :  { %v575_v24 = vpop.f32.mrb[0].mxu0 }
  0xda   :  { %v153_v25 = vadd.f32 %v575_v24, %v52_v23  ;;  %v147_v26 = vpop.f32.mrb[1].mxu0  ;;  %v434_v24 = vpop.permute.xlu0 %433 }
  0xdb   :  { %v148_v27 = vadd.f32 %v147_v26, %v47_v21  ;;  %v436_v21 = vlaneseq }
  0xdc   :  { %v167_v28 = vmax.f32 %v153_v25, 0.0 }
  0xdd   :  { %v166_v30 = vmax.f32 %v148_v27, 0.0  ;;  %v578_v31 = vpop.f32.mrb[2].mxu0 }
  0xde   :  { %v163_v32 = vadd.f32 %v578_v31, %v62_v29  ;;  %v157_v33 = vpop.f32.mrb[3].mxu0 }
  0xdf   :  { %v158_v34 = vadd.f32 %v157_v33, %v57_v22  ;;  %v618_v35 = vpack.c.bf16 %v167_v28, %v166_v30  ;;  %v437_v22 = vshrl.u32 %v436_v21, 7 }
  0xe0   :  { %v169_v36 = vmax.f32 %v163_v32, 0.0 }
  0xe1   :  { %v168_v37 = vmax.f32 %v158_v34, 0.0  ;;  %619 = vmatprep.subr.bf16.mxu1 %v618_v35  ;;  %v438_v23 = vsub.s32 0, %v437_v22 }
  0xe2   :  { %621 = vmatpush3.bf16.msra.mxu1 %v618_v35 }
  0xe3   :  { %v622_v38 = vpack.c.bf16 %v169_v36, %v168_v37  ;;  %v439_v25 = vrot.slane %v434_v24, %v438_v23 }
  0xe5   :  { %623 = vmatprep.subr.bf16.mxu1 %v622_v38 }
  0xe6   :  { %625 = vmatpush3.bf16.msra.mxu1 %v622_v38 }
  0xe7   :  { %634 = vmatprep.subr.bf16.mxu1 %v674_v0 }
  0xe9   :  { %588 = vmatmul.mubr.msk.f32.vlgmr.msra.gmra.mrb[0].mxu1 %vm198_vm2, %v171_v39 }
  0xea   :  { %590 = vmatprep.mubr.msk.f32.mxu1 %vm198_vm2, %v172_v40 }
  0xed   :  { %591 = vmatmul.mubr.msk.f32.gmra.mrb[2].mxu1 %vm198_vm2, %v173_v41 }
  0xee   :  { %615 = vmatprep.mubr.msk.f32.mxu1 %vm675_vm3, %v676_v1 }
 0x1bc   :  { %v589_v45 = vpop.f32.mrb[0].mxu1 }
 0x1bd   :  { %v283_v46 = vadd.f32 %v589_v45, %v186_v43  ;;  %v277_v47 = vpop.f32.mrb[1].mxu1 }
 0x1be   :  { %v278_v48 = vadd.f32 %v277_v47, %v181_v44 }
 0x1bf   :  { %v297_v49 = vmax.f32 %v283_v46, 0.0 }
 0x1c0   :  { %v296_v51 = vmax.f32 %v278_v48, 0.0  ;;  %v592_v52 = vpop.f32.mrb[2].mxu1 }
 0x1c1   :  { %v293_v54 = vadd.f32 %v592_v52, %v196_v50  ;;  %v287_v55 = vpop.f32.mrb[3].mxu1 }
 0x1c2   :  { %v626_v56 = vpack.c.bf16 %v297_v49, %v296_v51  ;;  %v288_v57 = vadd.f32 %v287_v55, %v191_v53 }
 0x1c3   :  { %v299_v58 = vmax.f32 %v293_v54, 0.0 }
 0x1c4   :  { %v298_v59 = vmax.f32 %v288_v57, 0.0  ;;  %627 = vmatprep.subr.bf16.mxu0 %v626_v56 }
 0x1c5   :  { %629 = vmatpush3.bf16.msra.mxu0 %v626_v56 }
 0x1c6   :  { %v630_v60 = vpack.c.bf16 %v299_v58, %v298_v59 }
 0x1c8   :  { %631 = vmatprep.subr.bf16.mxu0 %v630_v60 }
 0x1c9   :  { %633 = vmatpush3.bf16.msra.mxu0 %v630_v60 }
 0x1cc   :  { %602 = vmatmul.mubr.msk.f32.vlgmr.msra.gmra.mrb[4].mxu0 %vm198_vm2, %v301_v61 }
 0x1cd   :  { %604 = vmatprep.mubr.msk.f32.mxu0 %vm198_vm2, %v302_v62 }
 0x1d0   :  { %605 = vmatmul.mubr.msk.f32.gmra.mrb[6].mxu0 %vm198_vm2, %v303_v63 }
 0x29f   :  { %v603_v4 = vpop.f32.mrb[4].mxu0 }
 0x2a0   :  { %v412_v5 = vadd.f32 %v603_v4, %v316_v2  ;;  %v406_v6 = vpop.f32.mrb[5].mxu0 }
 0x2a1   :  { %v407_v7 = vadd.f32 %v406_v6, %v311_v3 }
 0x2a2   :  { %v426_v8 = vmax.f32 %v412_v5, 0.0 }
 0x2a3   :  { %v425_v10 = vmax.f32 %v407_v7, 0.0  ;;  %v606_v11 = vpop.f32.mrb[6].mxu0 }
 0x2a4   :  { %v422_v13 = vadd.f32 %v606_v11, %v326_v9  ;;  %v416_v14 = vpop.f32.mrb[7].mxu0 }
 0x2a5   :  { %v635_v15 = vpack.c.bf16 %v426_v8, %v425_v10  ;;  %v417_v16 = vadd.f32 %v416_v14, %v321_v12 }
 0x2a6   :  { %v428_v17 = vmax.f32 %v422_v13, 0.0 }
 0x2a7   :  { %v427_v18 = vmax.f32 %v417_v16, 0.0  ;;  %636 = vmatpush3.bf16.msra.mxu1 %v635_v15 }
 0x2a8   :  { %637 = vmatprep.subr.bf16.mxu1 %v674_v0 }
 0x2a9   :  { %v638_v19 = vpack.c.bf16 %v428_v17, %v427_v18 }
 0x2ab   :  { %639 = vmatpush3.bf16.msra.mxu1 %v638_v19 }
 0x2ae   :  { %616 = vmatmul.mubr.msk.f32.vlgmr.msra.gmra.mrb[4].mxu1 %vm198_vm2, %v429_v20 }
 0x381   :  { %v509_v26 = vpop.f32.mrb[4].mxu1 }
 0x382   :  { %v510_v27 = vadd.f32 %v509_v26, %v439_v25  ;;  %v617_v28 = vpop.f32.mrb[5].mxu1 }
 0x384   :  { %647 = vtanh.f32 %v510_v27 }
 0x38e   :  { %v648_v29 = vpop.eup %647 }
 0x38f   :  { %v514_v30 = vmul.f32 2.0, %v648_v29 }
 0x391   :  { %516 = vst.msk [vmem:[#allocation3] sm:$0x1] %vm515_vm4, %v514_v30 }
 0x392   :  { %660 = shalt.err (!%p657_p4)
}
 0x393   :  { %s661_s14 = scalar_lea.hbm %s843_s9, 16 }
 0x394   :  { %p662_p5 = scmp.ne.s32.totalorder %s843_s9, %s661_s14  ;;  %p665_p6 = scmp.lt.u32.totalorder %s661_s14, %s843_s9 }
 0x396   :  { %p667_p7 = pnand %p665_p6, %p662_p5 }
 0x398   :  { %670 = shalt.err (!%p667_p7)
}
 0x399   :  { %526 = dma.vmem_to_hbm [thread:$0]  %s524_s2, 16, %s843_s9, [#allocation4]  }
 0x39a   :  { %671 = dma.done.wait [#allocation4], 16  }
 0x39b   :  { %672 = vsyncadd [#allocation4], 4294967280 }
 0x39c   :  { %530 = vsyncpa [#allocation4], 1 }

</bundles_post_ra>
